<compile_context>
chip_gen: v6e
topology: v6e:2x2x1
jax: 0.10.0
libtpu: 0.0.40
codegen_flags: <defaults>
</compile_context>

<pallas_src>
import functools

import jax
import jax.numpy as jnp
from jax.experimental import pallas as pl
from jax.experimental.pallas import tpu as pltpu


def _cdiv(a, b):
    return -(-a // b)


def _logit_adjust_ce_kernel(x_ref, m_ref, t_ref, out_ref, *, n_valid, tile_rows):
    # x_ref:   (TN, C) native-dtype logits tile (trailing tile may hold garbage rows)
    # m_ref:   (1, C)  f32 margins (same block every grid step -> stays resident)
    # t_ref:   (TN, 1) i32 targets tile
    # out_ref: (1, 1, 1) f32 per-tile partial loss sum
    i = pl.program_id(0)

    # Compute in f32 regardless of input dtype (required on v5e anyway).
    xm = x_ref[...].astype(jnp.float32) + m_ref[...]                    # (TN, C)

    # Numerically stable logsumexp per row.
    row_max = jnp.max(xm, axis=-1, keepdims=True)                       # (TN, 1)
    sumexp = jnp.sum(jnp.exp(xm - row_max), axis=-1, keepdims=True)     # (TN, 1)
    lse = row_max + jnp.log(sumexp)                                     # (TN, 1)

    # Target gather via one-hot select on xm (VPU/XLU; no dynamic gather, no MXU).
    col = jax.lax.broadcasted_iota(jnp.int32, xm.shape, 1)              # (TN, C)
    picked = jnp.sum(jnp.where(col == t_ref[...], xm, 0.0),
                     axis=-1, keepdims=True)                            # (TN, 1)

    loss = lse - picked                                                 # (TN, 1)

    # Mask rows beyond the true batch (partial trailing tile).  jnp.where so
    # NaN/Inf garbage in those rows can never poison the sum.
    row = i * tile_rows + jax.lax.broadcasted_iota(jnp.int32, loss.shape, 0)
    loss = jnp.where(row < n_valid, loss, 0.0)

    out_ref[...] = jnp.sum(loss).reshape(out_ref.shape)


def logit_adjust_cross_entropy(x, target, m_list):
    """x: (N, C) float logits, target: (N,) int, m_list: (C,) float -> scalar f32."""
    n, c = x.shape
    itemsize = jnp.dtype(x.dtype).itemsize

    # Row-tile size: ~4 MiB per x tile (BlockSpec double-buffers it), capped at
    # 2048 rows, floor 8.  Comfortable on v5e/v6e (128 MiB VMEM) and v7x (64 MiB).
    budget_bytes = 4 * 1024 * 1024
    tn = (budget_bytes // max(1, c * itemsize)) // 8 * 8
    tn = int(max(8, min(2048, tn)))
    if n <= tn:
        tn = n  # single tile; block dim equal to the full array dim is legal
    num_tiles = _cdiv(n, tn)

    tile_bytes = tn * c * itemsize
    if 2 * tile_bytes > 48 * 1024 * 1024:
        # TODO(synk): class-axis grid with streaming logsumexp for very large C.
        raise NotImplementedError("class dimension too large for a single row tile")

    # Explicit scoped-VMEM budget: double-buffered x tile + tiny m/t/out + headroom.
    vmem_limit = int(min(
        96 * 1024 * 1024,
        max(16 * 1024 * 1024,
            2 * (2 * tile_bytes + 2 * tn * 4 + 2 * c * 4) + (1 << 20))))

    m2 = m_list.reshape(1, c).astype(jnp.float32)
    t2 = target.reshape(n, 1).astype(jnp.int32)

    kernel = functools.partial(_logit_adjust_ce_kernel, n_valid=n, tile_rows=tn)

    partials = pl.pallas_call(
        kernel,
        out_shape=jax.ShapeDtypeStruct((num_tiles, 1, 1), jnp.float32),
        grid_spec=pltpu.PrefetchScalarGridSpec(
            num_scalar_prefetch=0,
            grid=(num_tiles,),
            in_specs=[
                pl.BlockSpec((tn, c), lambda i: (i, 0)),
                pl.BlockSpec((1, c), lambda i: (0, 0)),
                pl.BlockSpec((tn, 1), lambda i: (i, 0)),
            ],
            out_specs=pl.BlockSpec((1, 1, 1), lambda i: (i, 0, 0)),
        ),
        compiler_params=pltpu.CompilerParams(
            dimension_semantics=("parallel",),
            vmem_limit_bytes=vmem_limit),
    )(x, m2, t2)

    # TODO(synk): per-class `weight` (module default weight=None) not implemented.
    return jnp.sum(partials) / jnp.float32(n)


def make_m_list(cls_num_list, tau=1.0):
    """Deterministic parameter setup matching LogitAdjust.__init__."""
    cls_num = jnp.asarray(cls_num_list, dtype=jnp.float32)
    cls_p = cls_num / jnp.sum(cls_num)
    return tau * jnp.log(cls_p)  # (C,)


if __name__ == "__main__":
    N, C = 8, 16

    # Deterministic class-count list (stands in for the dataset histogram).
    cls_num_list = [float(10 * (i + 1)) for i in range(C)]
    m_list = make_m_list(cls_num_list, tau=1.0)

    key = jax.random.PRNGKey(0)
    kx, kt = jax.random.split(key)
    x = jax.random.normal(kx, (N, C), dtype=jnp.float32)
    target = jax.random.randint(kt, (N,), 0, C, dtype=jnp.int32)

    loss = logit_adjust_cross_entropy(x, target, m_list)
    jax.block_until_ready(loss)

    # Sanity check against a pure-JAX reference of the same math.
    xm = x + m_list.reshape(1, C)
    ref = jnp.mean(
        jax.scipy.special.logsumexp(xm, axis=-1)
        - jnp.take_along_axis(xm, target[:, None], axis=-1)[:, 0]
    )
    assert jnp.allclose(loss, ref, atol=1e-5, rtol=1e-5), (loss, ref)

    print("KERNEL_OK")
</pallas_src>

<mosaic_0001>
module attributes {stable_mosaic.version = 11 : i64} {
  func.func @_logit_adjust_ce_kernel(%arg0: i32, %arg1: memref<8x16xf32, #tpu.memory_space<vmem>>, %arg2: memref<1x16xf32, #tpu.memory_space<vmem>>, %arg3: memref<8x1xi32, #tpu.memory_space<vmem>>, %arg4: memref<1x1x1xf32, #tpu.memory_space<vmem>>) attributes {dimension_semantics = [#tpu.dimension_semantics<parallel>], iteration_bounds = array<i64: 1>, scalar_prefetch = 0 : i64, scratch_operands = 0 : i64, tpu.core_type = #tpu.core_type<tc>, window_params = [{transform_indices = @transform_0, window_bounds = array<i64: 8, 16>}, {pipeline_mode = #tpu.pipeline_mode<synchronous>, transform_indices = @transform_1, window_bounds = array<i64: 1, 16>}, {transform_indices = @transform_2, window_bounds = array<i64: 8, 1>}, {transform_indices = @transform_3, window_bounds = array<i64: 1, 1, 1>}]} {
    %c0 = arith.constant 0 : index
    %c0_0 = arith.constant 0 : index
    %0 = vector.load %arg1[%c0, %c0_0] : memref<8x16xf32, #tpu.memory_space<vmem>>, vector<8x16xf32>
    %c0_1 = arith.constant 0 : index
    %c0_2 = arith.constant 0 : index
    %1 = vector.load %arg2[%c0_1, %c0_2] : memref<1x16xf32, #tpu.memory_space<vmem>>, vector<1x16xf32>
    %2 = vector.broadcast %1 : vector<1x16xf32> to vector<8x16xf32>
    %3 = arith.addf %0, %2 : vector<8x16xf32>
    %cst = arith.constant dense<0xFF800000> : vector<8xf32>
    %4 = vector.multi_reduction <maximumf>, %3, %cst [1] : vector<8x16xf32> to vector<8xf32>
    %5 = vector.shape_cast %4 : vector<8xf32> to vector<8x1xf32>
    %6 = vector.broadcast %5 : vector<8x1xf32> to vector<8x16xf32>
    %7 = arith.subf %3, %6 : vector<8x16xf32>
    %8 = math.exp %7 : vector<8x16xf32>
    %cst_3 = arith.constant dense<0.000000e+00> : vector<8xf32>
    %9 = vector.multi_reduction <add>, %8, %cst_3 [1] : vector<8x16xf32> to vector<8xf32>
    %10 = vector.shape_cast %9 : vector<8xf32> to vector<8x1xf32>
    %11 = math.log %10 : vector<8x1xf32>
    %12 = arith.addf %5, %11 : vector<8x1xf32>
    %13 = tpu.iota {dimensions = array<i32: 1>} : vector<8x16xi32>
    %c0_4 = arith.constant 0 : index
    %c0_5 = arith.constant 0 : index
    %14 = vector.load %arg3[%c0_4, %c0_5] : memref<8x1xi32, #tpu.memory_space<vmem>>, vector<8x1xi32>
    %15 = vector.broadcast %14 : vector<8x1xi32> to vector<8x16xi32>
    %16 = arith.cmpi eq, %13, %15 : vector<8x16xi32>
    %cst_6 = arith.constant 0.000000e+00 : f32
    %17 = vector.broadcast %cst_6 : f32 to vector<8x16xf32>
    %18 = arith.select %16, %3, %17 : vector<8x16xi1>, vector<8x16xf32>
    %cst_7 = arith.constant dense<0.000000e+00> : vector<8xf32>
    %19 = vector.multi_reduction <add>, %18, %cst_7 [1] : vector<8x16xf32> to vector<8xf32>
    %20 = vector.shape_cast %19 : vector<8xf32> to vector<8x1xf32>
    %21 = arith.subf %12, %20 : vector<8x1xf32>
    %c8_i32 = arith.constant 8 : i32
    %22 = arith.muli %arg0, %c8_i32 : i32
    %23 = tpu.iota {dimensions = array<i32: 0>} : vector<8x1xi32>
    %24 = vector.broadcast %22 : i32 to vector<8x1xi32>
    %25 = arith.addi %24, %23 : vector<8x1xi32>
    %c8_i32_8 = arith.constant 8 : i32
    %26 = vector.broadcast %c8_i32_8 : i32 to vector<8x1xi32>
    %27 = arith.cmpi slt, %25, %26 : vector<8x1xi32>
    %cst_9 = arith.constant 0.000000e+00 : f32
    %28 = vector.broadcast %cst_9 : f32 to vector<8x1xf32>
    %29 = arith.select %27, %21, %28 : vector<8x1xi1>, vector<8x1xf32>
    %30 = vector.shape_cast %29 : vector<8x1xf32> to vector<1x8x1xf32>
    %cst_10 = arith.constant dense<0.000000e+00> : vector<1xf32>
    %31 = vector.multi_reduction <add>, %30, %cst_10 [1, 2] : vector<1x8x1xf32> to vector<1xf32>
    %32 = vector.shape_cast %31 : vector<1xf32> to vector<1x1x1xf32>
    %33 = vector.extract %32[0, 0, 0] : f32 from vector<1x1x1xf32>
    %34 = vector.broadcast %33 : f32 to vector<1x1x1xf32>
    %c0_11 = arith.constant 0 : index
    %c0_12 = arith.constant 0 : index
    %c0_13 = arith.constant 0 : index
    %35 = vector.load %arg4[%c0_11, %c0_12, %c0_13] : memref<1x1x1xf32, #tpu.memory_space<vmem>>, vector<1x1x1xf32>
    tpu.vector_store %arg4[%c0_11, %c0_12, %c0_13], %34 {strides = array<i32>} : memref<1x1x1xf32, #tpu.memory_space<vmem>>, vector<1x1x1xf32>,
    return
  }
  func.func @transform_0(%arg0: i32) -> (i32, i32) {
    %c0_i32 = arith.constant 0 : i32
    %c0_i32_0 = arith.constant 0 : i32
    return %arg0, %c0_i32 : i32, i32
  }
  func.func @transform_1(%arg0: i32) -> (i32, i32) {
    %c0_i32 = arith.constant 0 : i32
    %c0_i32_0 = arith.constant 0 : i32
    %c0_i32_1 = arith.constant 0 : i32
    return %c0_i32, %c0_i32_0 : i32, i32
  }
  func.func @transform_2(%arg0: i32) -> (i32, i32) {
    %c0_i32 = arith.constant 0 : i32
    %c0_i32_0 = arith.constant 0 : i32
    return %arg0, %c0_i32 : i32, i32
  }
  func.func @transform_3(%arg0: i32) -> (i32, i32, i32) {
    %c0_i32 = arith.constant 0 : i32
    %c0_i32_0 = arith.constant 0 : i32
    %c0_i32_1 = arith.constant 0 : i32
    return %arg0, %c0_i32, %c0_i32_0 : i32, i32, i32
  }
}

</mosaic_0001>

<bundles_post_ra>
// kernel: tpu_custom_call.1
= control target key start
LH: loop header
LB: loop body
LE: loop exit
PB: predicated region body
PF: predicated region fallthrough
CT: control target
= control target key end

     0   :  { %vm24_vm0 = vcmask 130048   ;;  %v116_v3 = vmov 0   ;;  %s153_s0 = inlined_call_operand.vmem [shape: f32[8,16], index: 0, kind: input, shape index: {}]   ;;  %s154_s1 = inlined_call_operand.vmem [shape: f32[1,16], index: 1, kind: input, shape index: {}]   ;;  %s155_s2 = inlined_call_operand.vmem [shape: s32[8,1], index: 2, kind: input, shape index: {}]   ;;  %s156_s3 = inlined_call_operand.hbm [shape: f32[1,1,1], index: 3, kind: output, shape index: {}]  }
   0x1   :  { %v15_v0 = vld [vmem:[%s153_s0] sm:$0xff]  ;;  %89 = vset.pattern.permute.xlu0 %v116_v3 }
   0x2   :  { %v84_v1 = vld [vmem:[%s154_s1] ss:$0 sm:$0xff] }
   0x3   :  { %v23_v2 = vadd.f32 %v84_v1, %v15_v0 }
   0x4   :  { %8 = vsyncpa [#allocation3], 0  ;;  %v39_v5 = vld [vmem:[%s155_s2] sm:$0xff]  ;;  %v37_v9 = vlaneseq  ;;  %vm56_vm2 = vcmask 7168   ;;  %s117_s0 = smov [#allocation2]   ;;  %vm68_vm3 = vcmask 0  }
   0x5   :  { %v25_v4 = vsel %vm24_vm0, %v23_v2, -inf  ;;  %s76_s1 = sshll.u32 %s117_s0, 4  ;;  %s77_s1 = int_to_ptr.vmem [resolvable:$true] %s76_s1 }
   0x6   :  { %26 = vmax.xlane.f32.xlu0 %v25_v4  ;;  %v38_v10 = vand.u32 127, %v37_v9  ;;  %s94_s18 = scalar_lea.vmem %s77_s1, 16  ;;  %s98_s19 = scalar_lea.vmem %s77_s1, 32 }
   0x7   :  { %p95_p0 = scmp.ne.s32.totalorder %s77_s1, %s94_s18  ;;  %p99_p1 = scmp.lt.s32.totalorder %s77_s1, %s77_s1 }
   0x8   :  { %p100_p2 = scmp.lt.s32.totalorder %s98_s19, %s94_s18 }
   0xa   :  { %p101_p3 = por %p100_p2, %p99_p1 }
   0xc   :  { %p102_p4 = pnand %p101_p3, %p95_p0 }
  0x1c   :  { %41 = vperm.xlu0 %89, %v39_v5  }
  0x8f   :  { %v27_v6 = vpop.xlane.xlu0 %26 }
  0x90   :  { %v28_v7 = vsub.f32 %v23_v2, %v27_v6 }
  0x92   :  { %v29_v8 = vmul.f32 1.442695, %v28_v7 }
  0x94   :  { %90 = vpow2.f32 %v29_v8 }
  0x97   :  { %v42_v11 = vpop.permute.xlu0 %41 }
  0x98   :  { %vm43_vm1 = vcmp.eq.s32.totalorder %v38_v10, %v42_v11 }
  0x99   :  { %v44_v13 = vsel %vm43_vm1, %v23_v2, 0.0 }
  0x9a   :  { %v45_v15 = vsel %vm24_vm0, %v44_v13, 0.0 }
  0xa1   :  { %v91_v12 = vpop.eup %90 }
  0xa2   :  { %v31_v14 = vsel %vm24_vm0, %v91_v12, 0.0 }
  0xa3   :  { %32 = vadd.xlane.f32.xlu1 %v31_v14 }
  0xa7   :  { %46 = vadd.xlane.f32.xlu1 %v45_v15 }
 0x12c   :  { %v33_v16 = vpop.xlane.xlu1 %32 }
 0x12d   :  { %92 = vlog2.f32 %v33_v16 }
 0x130   :  { %v47_v19 = vpop.xlane.xlu1 %46 }
 0x13a   :  { %v93_v17 = vpop.eup %92 }
 0x13b   :  { %v35_v18 = vmul.f32 0.6931472, %v93_v17 }
 0x13d   :  { %v36_v20 = vadd.f32 %v35_v18, %v27_v6 }
 0x13f   :  { %v48_v21 = vsub.f32 %v36_v20, %v47_v19 }
 0x141   :  { %v57_v22 = vsel %vm56_vm2, %v48_v21, 0.0 }
 0x142   :  { %58 = vadd.xlane.f32.xlu1 %v57_v22 }
 0x1cb   :  { %v59_v23 = vpop.xlane.xlu1 %58 }
 0x1cc   :  { %v60_v24 = vrot.slane %v59_v23, 4 }
 0x1ce   :  { %v61_v25 = vadd.f32 %v60_v24, %v59_v23 }
 0x1d0   :  { %v62_v26 = vrot.slane %v61_v25, 2 }
 0x1d2   :  { %v63_v27 = vadd.f32 %v62_v26, %v61_v25 }
 0x1d4   :  { %v64_v28 = vrot.slane %v63_v27, 1 }
 0x1d6   :  { %v65_v29 = vadd.f32 %v64_v28, %v63_v27 }
 0x1d8   :  { %85 = vpush %v65_v29 }
 0x209   :  { %s86_s2 = spop %85 }
 0x20a   :  { %v67_v30 = vstv %s86_s2 }
 0x20b   :  { %69 = vst.msk [vmem:[#allocation2] sm:$0x1] %vm68_vm3, %v67_v30 }
 0x20c   :  { %105 = shalt.err (!%p102_p4)
}
 0x20d   :  { %79 = dma.vmem_to_hbm [thread:$0]  %s77_s1, 16, %s156_s3, [#allocation3]  }
 0x20e   :  { %114 = dma.done.wait [#allocation3], 16  }
 0x20f   :  { %115 = vsyncadd [#allocation3], 4294967280 }
 0x210   :  { %83 = vsyncpa [#allocation3], 1 }

</bundles_post_ra>
